<compile_context>
chip_gen: v5e
topology: v5e:2x2
jax: 0.10.0
libtpu: 0.0.40
codegen_flags: <defaults>
</compile_context>

<pallas_src>
import functools

import jax
import jax.numpy as jnp
from jax.experimental import pallas as pl
from jax.experimental.pallas import tpu as pltpu

N_STATES = 3
N_HIDDEN = 50
N_ACTIONS = 4

# Flipped to False (once) if this Mosaic build cannot lower the in-kernel
# (tb, 3) -> (3, tb) relayout; the fallback path feeds a feature-major x
# (wrapper-side x.T), i.e. the previously validated data path.
_NATIVE_X_OK = True


def _round_up(x, m):
    return ((x + m - 1) // m) * m


def _net_kernel(x_ref, w1_ref, b1_ref, w2_ref, b2_ref, oT_ref, *, x_is_feature_major):
    # x_ref : (TB, 3) native batch-major tile   (or (3, TB) on the fallback path)
    # w1_ref: (50, 3)  PyTorch fc1.weight layout (out, in)
    # b1_ref: (50, 1)
    # w2_ref: (4, 50)  PyTorch out.weight layout (out, in)
    # b2_ref: (4, 1)
    # oT_ref: (4, TB)  lane-dense output tile (y^T)
    if x_is_feature_major:
        xT = x_ref[...]                       # already (3, TB)
    else:
        xT = x_ref[...].T                     # (TB, 3) -> (3, TB) in-kernel relayout (XLU)

    w1 = w1_ref[...]                          # (50, 3)
    # fc1 as a 3-term VPU outer-product accumulate: h^T = W1 @ x^T + b1.
    # K = 3 is far too small for the MXU; this keeps the MXU free for fc2.
    h = (w1[:, 0:1] * xT[0:1, :]
         + w1[:, 1:2] * xT[1:2, :]
         + w1[:, 2:3] * xT[2:3, :]
         + b1_ref[...])                       # (50, TB)
    h = jnp.maximum(h, 0.0)                   # ReLU

    # fc2 stays on the MXU (K = 50): y^T = W2 @ h^T + b2
    y = jnp.dot(w2_ref[...], h, preferred_element_type=jnp.float32) + b2_ref[...]
    oT_ref[...] = y.astype(oT_ref.dtype)


def _build_call(tb, grid, B, vmem_limit, x_is_feature_major):
    if x_is_feature_major:
        x_spec = pl.BlockSpec((N_STATES, tb), lambda i: (0, i))   # x^T tile (pipelined)
    else:
        x_spec = pl.BlockSpec((tb, N_STATES), lambda i: (i, 0))   # native x tile (pipelined)

    kernel = functools.partial(_net_kernel, x_is_feature_major=x_is_feature_major)
    return pl.pallas_call(
        kernel,
        out_shape=jax.ShapeDtypeStruct((N_ACTIONS, B), jnp.float32),
        grid=grid,
        in_specs=[
            x_spec,
            pl.BlockSpec((N_HIDDEN, N_STATES), lambda i: (0, 0)),   # weights: VMEM-resident
            pl.BlockSpec((N_HIDDEN, 1), lambda i: (0, 0)),
            pl.BlockSpec((N_ACTIONS, N_HIDDEN), lambda i: (0, 0)),
            pl.BlockSpec((N_ACTIONS, 1), lambda i: (0, 0)),
        ],
        out_specs=pl.BlockSpec((N_ACTIONS, tb), lambda i: (0, i)),  # lane-dense output
        compiler_params=pltpu.CompilerParams(
            dimension_semantics=("parallel",),   # batch tiles are independent (megacore)
            vmem_limit_bytes=vmem_limit,
        ),
    )


def net_forward(x, w1, b1, w2, b2, *, block_b=4096):
    """Fused fc1 -> ReLU -> out forward pass (matches the PyTorch `Net`).

    x : (B, N_STATES)           f32   (native PyTorch layout)
    w1: (N_HIDDEN, N_STATES)    f32   (PyTorch fc1.weight)
    b1: (N_HIDDEN,)             f32
    w2: (N_ACTIONS, N_HIDDEN)   f32   (PyTorch out.weight)
    b2: (N_ACTIONS,)            f32
    returns (B, N_ACTIONS) f32
    """
    global _NATIVE_X_OK
    B = x.shape[0]
    b1c = b1.reshape(N_HIDDEN, 1)
    b2c = b2.reshape(N_ACTIONS, 1)

    # --- tile selection ---------------------------------------------------
    if B <= 128:
        tb = B                                 # single full block; no tiling / no masking games
    else:
        bb = max(128, _round_up(int(block_b), 128))        # lane-dim must be 128-aligned
        # shrink just enough that the grid has >= 2 steps (keeps both v7x cores busy),
        # but never above block_b (VMEM cap, esp. v7x's 64 MiB).
        tb = min(bb, _round_up(pl.cdiv(B, 2), 128))
    grid = (pl.cdiv(B, tb),)                   # ragged final block handled by Pallas masking

    # Per-step VMEM footprint estimate (f32, (8,128)-tiled layout):
    #   x  : 2 * tb * 128 * 4   (minor dim 3 pads to one 128-lane tile; double-buffered)
    #   out: 2 * 8 * tb * 4     (4 sublanes pad to 8; double-buffered)
    #   h / xT scratch: ~(56 + 8) * tb * 4
    per_step_bytes = tb * (2 * 128 * 4 + 2 * 8 * 4 + 64 * 4)
    vmem_limit = int(min(100 * 2**20, max(16 * 2**20, 2 * per_step_bytes + 2 * 2**20)))

    def run(feature_major):
        xin = x.T if feature_major else x
        call = _build_call(tb, grid, B, vmem_limit, feature_major)
        return call(xin, w1, b1c, w2, b2c)

    if _NATIVE_X_OK:
        try:
            outT = run(False)                  # preferred: native x, in-kernel relayout
        except Exception:
            _NATIVE_X_OK = False               # one-time capability probe; fall back below
            outT = run(True)
    else:
        outT = run(True)

    return outT.T                              # (B, N_ACTIONS); only wrapper-side relayout


def init_params(key):
    """Parameter init mirroring the PyTorch module: weights ~ N(0, 0.1),
    biases use nn.Linear's default U(-1/sqrt(fan_in), +1/sqrt(fan_in))."""
    k1, k2, k3, k4 = jax.random.split(key, 4)
    w1 = 0.1 * jax.random.normal(k1, (N_HIDDEN, N_STATES), dtype=jnp.float32)
    bound1 = 1.0 / jnp.sqrt(jnp.float32(N_STATES))
    b1 = jax.random.uniform(k2, (N_HIDDEN,), minval=-bound1, maxval=bound1,
                            dtype=jnp.float32)
    w2 = 0.1 * jax.random.normal(k3, (N_ACTIONS, N_HIDDEN), dtype=jnp.float32)
    bound2 = 1.0 / jnp.sqrt(jnp.float32(N_HIDDEN))
    b2 = jax.random.uniform(k4, (N_ACTIONS,), minval=-bound2, maxval=bound2,
                            dtype=jnp.float32)
    return w1, b1, w2, b2


def _ref_forward(x, w1, b1, w2, b2):
    # plain-JAX reference identical to the PyTorch forward
    return jnp.maximum(x @ w1.T + b1, 0.0) @ w2.T + b2


if __name__ == "__main__":
    key = jax.random.PRNGKey(0)
    k_params, k_x1, k_x2 = jax.random.split(key, 3)
    w1, b1, w2, b2 = init_params(k_params)

    # 1) tiny per-step batch (single full block, like DQN action selection)
    B_small = 8
    x_small = jax.random.normal(k_x1, (B_small, N_STATES), dtype=jnp.float32)
    y_small = net_forward(x_small, w1, b1, w2, b2)
    jax.block_until_ready(y_small)
    assert y_small.shape == (B_small, N_ACTIONS)
    assert jnp.allclose(y_small, _ref_forward(x_small, w1, b1, w2, b2), atol=1e-5), \
        "small-batch mismatch vs reference"

    # 2) batch exercising the tiled cdiv grid (2 steps, ragged final block)
    B_big = 300
    x_big = jax.random.normal(k_x2, (B_big, N_STATES), dtype=jnp.float32)
    y_big = net_forward(x_big, w1, b1, w2, b2)
    jax.block_until_ready(y_big)
    assert y_big.shape == (B_big, N_ACTIONS)
    assert jnp.allclose(y_big, _ref_forward(x_big, w1, b1, w2, b2), atol=1e-5), \
        "tiled-batch mismatch vs reference"

    print("KERNEL_OK")
</pallas_src>

<mosaic_0001>
module attributes {stable_mosaic.version = 11 : i64} {
  func.func @_net_kernel(%arg0: i32, %arg1: memref<8x3xf32, #tpu.memory_space<vmem>>, %arg2: memref<50x3xf32, #tpu.memory_space<vmem>>, %arg3: memref<50x1xf32, #tpu.memory_space<vmem>>, %arg4: memref<4x50xf32, #tpu.memory_space<vmem>>, %arg5: memref<4x1xf32, #tpu.memory_space<vmem>>, %arg6: memref<4x8xf32, #tpu.memory_space<vmem>>) attributes {dimension_semantics = [#tpu.dimension_semantics<parallel>], iteration_bounds = array<i64: 1>, scalar_prefetch = 0 : i64, scratch_operands = 0 : i64, tpu.core_type = #tpu.core_type<tc>, window_params = [{transform_indices = @transform_0, window_bounds = array<i64: 8, 3>}, {pipeline_mode = #tpu.pipeline_mode<synchronous>, transform_indices = @transform_1, window_bounds = array<i64: 50, 3>}, {pipeline_mode = #tpu.pipeline_mode<synchronous>, transform_indices = @transform_2, window_bounds = array<i64: 50, 1>}, {pipeline_mode = #tpu.pipeline_mode<synchronous>, transform_indices = @transform_3, window_bounds = array<i64: 4, 50>}, {pipeline_mode = #tpu.pipeline_mode<synchronous>, transform_indices = @transform_4, window_bounds = array<i64: 4, 1>}, {transform_indices = @transform_5, window_bounds = array<i64: 4, 8>}]} {
    %c0 = arith.constant 0 : index
    %c0_0 = arith.constant 0 : index
    %0 = vector.load %arg1[%c0, %c0_0] : memref<8x3xf32, #tpu.memory_space<vmem>>, vector<8x3xf32>
    %1 = tpu.transpose %0, [1, 0] : vector<8x3xf32> -> vector<3x8xf32>
    %c0_1 = arith.constant 0 : index
    %c0_2 = arith.constant 0 : index
    %2 = vector.load %arg2[%c0_1, %c0_2] : memref<50x3xf32, #tpu.memory_space<vmem>>, vector<50x3xf32>
    %3 = vector.extract_strided_slice %2 {offsets = [0, 0], sizes = [50, 1], strides = [1, 1]} : vector<50x3xf32> to vector<50x1xf32>
    %4 = vector.extract_strided_slice %1 {offsets = [0, 0], sizes = [1, 8], strides = [1, 1]} : vector<3x8xf32> to vector<1x8xf32>
    %5 = vector.broadcast %3 : vector<50x1xf32> to vector<50x8xf32>
    %6 = vector.broadcast %4 : vector<1x8xf32> to vector<50x8xf32>
    %7 = arith.mulf %5, %6 : vector<50x8xf32>
    %8 = vector.extract_strided_slice %2 {offsets = [0, 1], sizes = [50, 1], strides = [1, 1]} : vector<50x3xf32> to vector<50x1xf32>
    %9 = vector.extract_strided_slice %1 {offsets = [1, 0], sizes = [1, 8], strides = [1, 1]} : vector<3x8xf32> to vector<1x8xf32>
    %10 = vector.broadcast %8 : vector<50x1xf32> to vector<50x8xf32>
    %11 = vector.broadcast %9 : vector<1x8xf32> to vector<50x8xf32>
    %12 = arith.mulf %10, %11 : vector<50x8xf32>
    %13 = arith.addf %7, %12 : vector<50x8xf32>
    %14 = vector.extract_strided_slice %2 {offsets = [0, 2], sizes = [50, 1], strides = [1, 1]} : vector<50x3xf32> to vector<50x1xf32>
    %15 = vector.extract_strided_slice %1 {offsets = [2, 0], sizes = [1, 8], strides = [1, 1]} : vector<3x8xf32> to vector<1x8xf32>
    %16 = vector.broadcast %14 : vector<50x1xf32> to vector<50x8xf32>
    %17 = vector.broadcast %15 : vector<1x8xf32> to vector<50x8xf32>
    %18 = arith.mulf %16, %17 : vector<50x8xf32>
    %19 = arith.addf %13, %18 : vector<50x8xf32>
    %c0_3 = arith.constant 0 : index
    %c0_4 = arith.constant 0 : index
    %20 = vector.load %arg3[%c0_3, %c0_4] : memref<50x1xf32, #tpu.memory_space<vmem>>, vector<50x1xf32>
    %21 = vector.broadcast %20 : vector<50x1xf32> to vector<50x8xf32>
    %22 = arith.addf %19, %21 : vector<50x8xf32>
    %cst = arith.constant 0.000000e+00 : f32
    %23 = vector.broadcast %cst : f32 to vector<50x8xf32>
    %24 = arith.maximumf %22, %23 : vector<50x8xf32>
    %c0_5 = arith.constant 0 : index
    %c0_6 = arith.constant 0 : index
    %25 = vector.load %arg4[%c0_5, %c0_6] : memref<4x50xf32, #tpu.memory_space<vmem>>, vector<4x50xf32>
    %cst_7 = arith.constant dense<0.000000e+00> : vector<4x8xf32>
    %26 = tpu.matmul %25, %24, %cst_7 {dimension_numbers = #tpu.dot_dimension_numbers<[1], [0], [0], [1], [0, 0, 1, 1], [], []>} : vector<4x50xf32>, vector<50x8xf32>, vector<4x8xf32> -> vector<4x8xf32>
    %c0_8 = arith.constant 0 : index
    %c0_9 = arith.constant 0 : index
    %27 = vector.load %arg5[%c0_8, %c0_9] : memref<4x1xf32, #tpu.memory_space<vmem>>, vector<4x1xf32>
    %28 = vector.broadcast %27 : vector<4x1xf32> to vector<4x8xf32>
    %29 = arith.addf %26, %28 : vector<4x8xf32>
    %c0_10 = arith.constant 0 : index
    %c0_11 = arith.constant 0 : index
    %30 = vector.load %arg6[%c0_10, %c0_11] : memref<4x8xf32, #tpu.memory_space<vmem>>, vector<4x8xf32>
    tpu.vector_store %arg6[%c0_10, %c0_11], %29 {strides = array<i32>} : memref<4x8xf32, #tpu.memory_space<vmem>>, vector<4x8xf32>,
    return
  }
  func.func @transform_0(%arg0: i32) -> (i32, i32) {
    %c0_i32 = arith.constant 0 : i32
    %c0_i32_0 = arith.constant 0 : i32
    return %arg0, %c0_i32 : i32, i32
  }
  func.func @transform_1(%arg0: i32) -> (i32, i32) {
    %c0_i32 = arith.constant 0 : i32
    %c0_i32_0 = arith.constant 0 : i32
    %c0_i32_1 = arith.constant 0 : i32
    return %c0_i32, %c0_i32_0 : i32, i32
  }
  func.func @transform_2(%arg0: i32) -> (i32, i32) {
    %c0_i32 = arith.constant 0 : i32
    %c0_i32_0 = arith.constant 0 : i32
    %c0_i32_1 = arith.constant 0 : i32
    return %c0_i32, %c0_i32_0 : i32, i32
  }
  func.func @transform_3(%arg0: i32) -> (i32, i32) {
    %c0_i32 = arith.constant 0 : i32
    %c0_i32_0 = arith.constant 0 : i32
    %c0_i32_1 = arith.constant 0 : i32
    return %c0_i32, %c0_i32_0 : i32, i32
  }
  func.func @transform_4(%arg0: i32) -> (i32, i32) {
    %c0_i32 = arith.constant 0 : i32
    %c0_i32_0 = arith.constant 0 : i32
    %c0_i32_1 = arith.constant 0 : i32
    return %c0_i32, %c0_i32_0 : i32, i32
  }
  func.func @transform_5(%arg0: i32) -> (i32, i32) {
    %c0_i32 = arith.constant 0 : i32
    %c0_i32_0 = arith.constant 0 : i32
    return %c0_i32, %arg0 : i32, i32
  }
}

module attributes {stable_mosaic.version = 11 : i64} {
  func.func @_net_kernel(%arg0: i32, %arg1: memref<3x8xf32, #tpu.memory_space<vmem>>, %arg2: memref<50x3xf32, #tpu.memory_space<vmem>>, %arg3: memref<50x1xf32, #tpu.memory_space<vmem>>, %arg4: memref<4x50xf32, #tpu.memory_space<vmem>>, %arg5: memref<4x1xf32, #tpu.memory_space<vmem>>, %arg6: memref<4x8xf32, #tpu.memory_space<vmem>>) attributes {dimension_semantics = [#tpu.dimension_semantics<parallel>], iteration_bounds = array<i64: 1>, scalar_prefetch = 0 : i64, scratch_operands = 0 : i64, tpu.core_type = #tpu.core_type<tc>, window_params = [{transform_indices = @transform_0, window_bounds = array<i64: 3, 8>}, {pipeline_mode = #tpu.pipeline_mode<synchronous>, transform_indices = @transform_1, window_bounds = array<i64: 50, 3>}, {pipeline_mode = #tpu.pipeline_mode<synchronous>, transform_indices = @transform_2, window_bounds = array<i64: 50, 1>}, {pipeline_mode = #tpu.pipeline_mode<synchronous>, transform_indices = @transform_3, window_bounds = array<i64: 4, 50>}, {pipeline_mode = #tpu.pipeline_mode<synchronous>, transform_indices = @transform_4, window_bounds = array<i64: 4, 1>}, {transform_indices = @transform_5, window_bounds = array<i64: 4, 8>}]} {
    %c0 = arith.constant 0 : index
    %c0_0 = arith.constant 0 : index
    %0 = vector.load %arg1[%c0, %c0_0] : memref<3x8xf32, #tpu.memory_space<vmem>>, vector<3x8xf32>
    %c0_1 = arith.constant 0 : index
    %c0_2 = arith.constant 0 : index
    %1 = vector.load %arg2[%c0_1, %c0_2] : memref<50x3xf32, #tpu.memory_space<vmem>>, vector<50x3xf32>
    %2 = vector.extract_strided_slice %1 {offsets = [0, 0], sizes = [50, 1], strides = [1, 1]} : vector<50x3xf32> to vector<50x1xf32>
    %3 = vector.extract_strided_slice %0 {offsets = [0, 0], sizes = [1, 8], strides = [1, 1]} : vector<3x8xf32> to vector<1x8xf32>
    %4 = vector.broadcast %2 : vector<50x1xf32> to vector<50x8xf32>
    %5 = vector.broadcast %3 : vector<1x8xf32> to vector<50x8xf32>
    %6 = arith.mulf %4, %5 : vector<50x8xf32>
    %7 = vector.extract_strided_slice %1 {offsets = [0, 1], sizes = [50, 1], strides = [1, 1]} : vector<50x3xf32> to vector<50x1xf32>
    %8 = vector.extract_strided_slice %0 {offsets = [1, 0], sizes = [1, 8], strides = [1, 1]} : vector<3x8xf32> to vector<1x8xf32>
    %9 = vector.broadcast %7 : vector<50x1xf32> to vector<50x8xf32>
    %10 = vector.broadcast %8 : vector<1x8xf32> to vector<50x8xf32>
    %11 = arith.mulf %9, %10 : vector<50x8xf32>
    %12 = arith.addf %6, %11 : vector<50x8xf32>
    %13 = vector.extract_strided_slice %1 {offsets = [0, 2], sizes = [50, 1], strides = [1, 1]} : vector<50x3xf32> to vector<50x1xf32>
    %14 = vector.extract_strided_slice %0 {offsets = [2, 0], sizes = [1, 8], strides = [1, 1]} : vector<3x8xf32> to vector<1x8xf32>
    %15 = vector.broadcast %13 : vector<50x1xf32> to vector<50x8xf32>
    %16 = vector.broadcast %14 : vector<1x8xf32> to vector<50x8xf32>
    %17 = arith.mulf %15, %16 : vector<50x8xf32>
    %18 = arith.addf %12, %17 : vector<50x8xf32>
    %c0_3 = arith.constant 0 : index
    %c0_4 = arith.constant 0 : index
    %19 = vector.load %arg3[%c0_3, %c0_4] : memref<50x1xf32, #tpu.memory_space<vmem>>, vector<50x1xf32>
    %20 = vector.broadcast %19 : vector<50x1xf32> to vector<50x8xf32>
    %21 = arith.addf %18, %20 : vector<50x8xf32>
    %cst = arith.constant 0.000000e+00 : f32
    %22 = vector.broadcast %cst : f32 to vector<50x8xf32>
    %23 = arith.maximumf %21, %22 : vector<50x8xf32>
    %c0_5 = arith.constant 0 : index
    %c0_6 = arith.constant 0 : index
    %24 = vector.load %arg4[%c0_5, %c0_6] : memref<4x50xf32, #tpu.memory_space<vmem>>, vector<4x50xf32>
    %cst_7 = arith.constant dense<0.000000e+00> : vector<4x8xf32>
    %25 = tpu.matmul %24, %23, %cst_7 {dimension_numbers = #tpu.dot_dimension_numbers<[1], [0], [0], [1], [0, 0, 1, 1], [], []>} : vector<4x50xf32>, vector<50x8xf32>, vector<4x8xf32> -> vector<4x8xf32>
    %c0_8 = arith.constant 0 : index
    %c0_9 = arith.constant 0 : index
    %26 = vector.load %arg5[%c0_8, %c0_9] : memref<4x1xf32, #tpu.memory_space<vmem>>, vector<4x1xf32>
    %27 = vector.broadcast %26 : vector<4x1xf32> to vector<4x8xf32>
    %28 = arith.addf %25, %27 : vector<4x8xf32>
    %c0_10 = arith.constant 0 : index
    %c0_11 = arith.constant 0 : index
    %29 = vector.load %arg6[%c0_10, %c0_11] : memref<4x8xf32, #tpu.memory_space<vmem>>, vector<4x8xf32>
    tpu.vector_store %arg6[%c0_10, %c0_11], %28 {strides = array<i32>} : memref<4x8xf32, #tpu.memory_space<vmem>>, vector<4x8xf32>,
    return
  }
  func.func @transform_0(%arg0: i32) -> (i32, i32) {
    %c0_i32 = arith.constant 0 : i32
    %c0_i32_0 = arith.constant 0 : i32
    return %c0_i32, %arg0 : i32, i32
  }
  func.func @transform_1(%arg0: i32) -> (i32, i32) {
    %c0_i32 = arith.constant 0 : i32
    %c0_i32_0 = arith.constant 0 : i32
    %c0_i32_1 = arith.constant 0 : i32
    return %c0_i32, %c0_i32_0 : i32, i32
  }
  func.func @transform_2(%arg0: i32) -> (i32, i32) {
    %c0_i32 = arith.constant 0 : i32
    %c0_i32_0 = arith.constant 0 : i32
    %c0_i32_1 = arith.constant 0 : i32
    return %c0_i32, %c0_i32_0 : i32, i32
  }
  func.func @transform_3(%arg0: i32) -> (i32, i32) {
    %c0_i32 = arith.constant 0 : i32
    %c0_i32_0 = arith.constant 0 : i32
    %c0_i32_1 = arith.constant 0 : i32
    return %c0_i32, %c0_i32_0 : i32, i32
  }
  func.func @transform_4(%arg0: i32) -> (i32, i32) {
    %c0_i32 = arith.constant 0 : i32
    %c0_i32_0 = arith.constant 0 : i32
    %c0_i32_1 = arith.constant 0 : i32
    return %c0_i32, %c0_i32_0 : i32, i32
  }
  func.func @transform_5(%arg0: i32) -> (i32, i32) {
    %c0_i32 = arith.constant 0 : i32
    %c0_i32_0 = arith.constant 0 : i32
    return %c0_i32, %arg0 : i32, i32
  }
}

</mosaic_0001>

<bundles_post_ra>
// kernel: tpu_custom_call.1
= control target key start
LH: loop header
LB: loop body
LE: loop exit
PB: predicated region body
PF: predicated region fallthrough
CT: control target
= control target key end

     0   :  { %v357_v3 = vmov 0   ;;  %s466_s0 = inlined_call_operand.vmem [shape: f32[8,3], index: 0, kind: input, shape index: {}]   ;;  %s467_s1 = inlined_call_operand.vmem [shape: f32[50,3], index: 1, kind: input, shape index: {}]   ;;  %s468_s2 = inlined_call_operand.vmem [shape: f32[50,1], index: 2, kind: input, shape index: {}]   ;;  %s469_s3 = inlined_call_operand.vmem [shape: f32[4,50], index: 3, kind: input, shape index: {}]   ;;  %s470_s4 = inlined_call_operand.vmem [shape: f32[4,1], index: 4, kind: input, shape index: {}]   ;;  %s471_s5 = inlined_call_operand.hbm [shape: f32[4,8], index: 5, kind: output, shape index: {}]  }
   0x1   :  { %v21_v0 = vld [vmem:[%s466_s0] sm:$0xff]  ;;  %v60_v1 = vld [vmem:[%s467_s1 + $0x30] sm:$0x3]  ;;  %v59_v2 = vld [vmem:[%s467_s1 + $0x28] sm:$0xff]  ;;  %309 = vset.pattern.permute.xlu2 %v357_v3  ;;  %307 = vset.pattern.permute.xlu1 %v357_v3 }
   0x2   :  { %10 = vsyncpa [#allocation3], 0  ;;  %22 = vxpose.xlu0.b32.start.end [1/1] (short) (narrow) %v21_v0, 8  ;;  %93 = vperm.xlu1 %307, %v60_v1   ;;  %v358_v4 = vmov 1   ;;  %v58_v5 = vld [vmem:[%s467_s1 + $0x20] sm:$0xff]  ;;  %v359_v6 = vmov 2  }
   0x3   :  { %88 = vperm.xlu2 %309, %v59_v2   ;;  %v57_v7 = vld [vmem:[%s467_s1 + $0x18] sm:$0xff]  ;;  %v196_v8 = vld [vmem:[%s468_s2 + $0x30] sm:$0x3]  ;;  %v195_v10 = vld [vmem:[%s468_s2 + $0x28] sm:$0xff]  ;;  %vm257_vm0 = vcmask 1041408   ;;  %vm253_vm1 = vcmask 408576  }
   0x4   :  { %v56_v9 = vld [vmem:[%s467_s1 + $0x10] sm:$0xff]  ;;  %v55_v11 = vld [vmem:[%s467_s1 + $0x8] sm:$0xff]  ;;  %v194_v12 = vld [vmem:[%s468_s2 + $0x20] sm:$0xff]  ;;  %s360_s23 = smov [#allocation2]   ;;  %s290_s26 = sshll.u32 %s471_s5, 4  ;;  %vm281_vm2 = vcmask 60416   ;;  %s291_s26 = int_to_ptr.hbm [resolvable:$true] %s290_s26 }
   0x5   :  { %v54_v13 = vld [vmem:[%s467_s1] sm:$0xff]  ;;  %v193_v15 = vld [vmem:[%s468_s2 + $0x18] sm:$0xff]  ;;  %v192_v17 = vld [vmem:[%s468_s2 + $0x10] sm:$0xff]  ;;  %s288_s0 = sshll.u32 %s360_s23, 4  ;;  %s289_s0 = int_to_ptr.vmem [resolvable:$true] %s288_s0 }
   0x6   :  { %v191_v18 = vld [vmem:[%s468_s2 + $0x8] sm:$0xff]  ;;  %v190_v20 = vld [vmem:[%s468_s2] sm:$0xff] }
   0x7   :  { %v247_v21 = vld [vmem:[%s470_s4] sm:$0xf] }
   0xa   :  { %308 = vset.pattern.permute.xlu1 %v358_v4 }
   0xb   :  { %310 = vset.pattern.permute.xlu2 %v358_v4  ;;  %129 = vperm.xlu1 %308, %v60_v1  }
   0xc   :  { %125 = vperm.xlu2 %310, %v59_v2  }
  0x13   :  { %311 = vset.pattern.permute.xlu1 %v359_v6 }
  0x14   :  { %312 = vset.pattern.permute.xlu2 %v357_v3  ;;  %172 = vperm.xlu1 %311, %v60_v1  }
  0x15   :  { %83 = vperm.xlu2 %312, %v58_v5  }
  0x1c   :  { %313 = vset.pattern.permute.xlu1 %v358_v4 }
  0x1d   :  { %314 = vset.pattern.permute.xlu2 %v359_v6  ;;  %121 = vperm.xlu1 %313, %v58_v5  }
  0x1e   :  { %168 = vperm.xlu2 %314, %v59_v2  }
  0x25   :  { %315 = vset.pattern.permute.xlu1 %v357_v3 }
  0x26   :  { %316 = vset.pattern.permute.xlu2 %v358_v4  ;;  %78 = vperm.xlu1 %315, %v57_v7  }
  0x27   :  { %117 = vperm.xlu2 %316, %v57_v7  }
  0x2e   :  { %317 = vset.pattern.permute.xlu1 %v359_v6 }
  0x2f   :  { %318 = vset.pattern.permute.xlu2 %v357_v3  ;;  %164 = vperm.xlu1 %317, %v58_v5  }
  0x30   :  { %229 = vperm.xlu2 %318, %v196_v8  }
  0x37   :  { %319 = vset.pattern.permute.xlu1 %v357_v3 }
  0x38   :  { %320 = vset.pattern.permute.xlu2 %v358_v4  ;;  %73 = vperm.xlu1 %319, %v56_v9  }
  0x39   :  { %113 = vperm.xlu2 %320, %v56_v9  }
  0x40   :  { %321 = vset.pattern.permute.xlu1 %v359_v6 }
  0x41   :  { %322 = vset.pattern.permute.xlu2 %v357_v3  ;;  %160 = vperm.xlu1 %321, %v57_v7  }
  0x42   :  { %224 = vperm.xlu2 %322, %v195_v10  }
  0x49   :  { %323 = vset.pattern.permute.xlu1 %v357_v3 }
  0x4a   :  { %324 = vset.pattern.permute.xlu2 %v358_v4  ;;  %68 = vperm.xlu1 %323, %v55_v11  }
  0x4b   :  { %109 = vperm.xlu2 %324, %v55_v11  }
  0x52   :  { %325 = vset.pattern.permute.xlu1 %v359_v6 }
  0x53   :  { %326 = vset.pattern.permute.xlu2 %v357_v3  ;;  %156 = vperm.xlu1 %325, %v56_v9  }
  0x54   :  { %219 = vperm.xlu2 %326, %v194_v12  }
  0x5b   :  { %327 = vset.pattern.permute.xlu1 %v358_v4 }
  0x5c   :  { %328 = vset.pattern.permute.xlu2 %v359_v6  ;;  %105 = vperm.xlu1 %327, %v54_v13  }
  0x5d   :  { %152 = vperm.xlu2 %328, %v55_v11   ;;  %v89_v14 = vpop.permute.xlu2 %88 }
  0x64   :  { %329 = vset.pattern.permute.xlu1 %v357_v3 }
  0x65   :  { %148 = vperm.xlu2 %328, %v54_v13   ;;  %214 = vperm.xlu1 %329, %v193_v15  }
  0x66   :  { %v126_v16 = vpop.permute.xlu2 %125 }
  0x69   :  { %306 = vset.pattern.permute.xlu0 %v357_v3 }
  0x6d   :  { %330 = vset.pattern.permute.xlu2 %v357_v3  ;;  %209 = vperm.xlu1 %329, %v192_v17  }
  0x6e   :  { %204 = vperm.xlu2 %330, %v191_v18  }
  0x6f   :  { %v84_v19 = vpop.permute.xlu2 %83 }
  0x70   :  { %63 = vperm.xlu0 %306, %v54_v13  }
  0x74   :  { %v94_v22 = vpop.permute.xlu1 %93 }
  0x75   :  { %199 = vperm.xlu1 %329, %v190_v20  }
  0x76   :  { %250 = vperm.xlu2 %330, %v247_v21  }
  0x78   :  { %v169_v23 = vpop.permute.xlu2 %168 }
  0x7d   :  { %v130_v24 = vpop.permute.xlu1 %129 }
  0x81   :  { %v118_v25 = vpop.permute.xlu2 %117 }
  0x86   :  { %v173_v26 = vpop.permute.xlu1 %172 }
  0x8a   :  { %v230_v27 = vpop.permute.xlu2 %229 }
  0x8f   :  { %v122_v28 = vpop.permute.xlu1 %121 }
  0x93   :  { %v114_v29 = vpop.permute.xlu2 %113 }
  0x98   :  { %v79_v30 = vpop.permute.xlu1 %78 }
  0x9c   :  { %v225_v31 = vpop.permute.xlu2 %224 }
  0xa1   :  { %v165_v32 = vpop.permute.xlu1 %164 }
  0xa5   :  { %v110_v33 = vpop.permute.xlu2 %109 }
  0xa6   :  { %v38_v34 = vpop.trf.xlu0 }
  0xa7   :  { %v96_v35 = vperm.slane %v38_v34, 0  ;;  %v132_v36 = vperm.slane %v38_v34, 1  ;;  %v451_v37 = vperm.slane %v38_v34, 2 }
  0xa9   :  { %v101_v38 = vmul.f32 %v96_v35, %v84_v19  ;;  %v137_v39 = vmul.f32 %v132_v36, %v122_v28  ;;  %v103_v41 = vmul.f32 %v96_v35, %v94_v22  ;;  %v139_v42 = vmul.f32 %v132_v36, %v130_v24 }
  0xaa   :  { %v74_v40 = vpop.permute.xlu1 %73  ;;  %v102_v43 = vmul.f32 %v96_v35, %v89_v14  ;;  %v138_v45 = vmul.f32 %v132_v36, %v126_v16  ;;  %v180_v46 = vmul.f32 %v451_v37, %v165_v32  ;;  %v182_v48 = vmul.f32 %v451_v37, %v173_v26 }
  0xab   :  { %v144_v44 = vadd.f32 %v137_v39, %v101_v38  ;;  %v146_v47 = vadd.f32 %v139_v42, %v103_v41  ;;  %v181_v50 = vmul.f32 %v451_v37, %v169_v23  ;;  %v100_v2 = vmul.f32 %v96_v35, %v79_v30  ;;  %v246_v39 = vld [vmem:[%s469_s3] sm:$0xf] }
  0xac   :  { %v145_v49 = vadd.f32 %v138_v45, %v102_v43  ;;  %v136_v3 = vmul.f32 %v132_v36, %v118_v25  ;;  %v134_v8 = vmul.f32 %v132_v36, %v110_v33  ;;  %v99_v11 = vmul.f32 %v96_v35, %v74_v40 }
  0xad   :  { %v187_v51 = vadd.f32 %v180_v46, %v144_v44  ;;  %v189_v52 = vadd.f32 %v182_v48, %v146_v47  ;;  %v135_v12 = vmul.f32 %v132_v36, %v114_v29 }
  0xae   :  { %v220_v53 = vpop.permute.xlu2 %219  ;;  %v188_v54 = vadd.f32 %v181_v50, %v145_v49  ;;  %v143_v6 = vadd.f32 %v136_v3, %v100_v2 }
  0xaf   :  { %v238_v55 = vadd.f32 %v230_v27, %v189_v52  ;;  %v236_v57 = vadd.f32 %v220_v53, %v187_v51  ;;  %v142_v18 = vadd.f32 %v135_v12, %v99_v11 }
  0xb0   :  { %v237_v56 = vadd.f32 %v225_v31, %v188_v54 }
  0xb1   :  { %v245_v58 = vmax.f32 %v238_v55, 0.0  ;;  %v243_v61 = vmax.f32 %v236_v57, 0.0 }
  0xb2   :  { %v244_v60 = vmax.f32 %v237_v56, 0.0 }
  0xb3   :  { %v161_v59 = vpop.permute.xlu1 %160  ;;  %299 = vmatpush.msk.msra.mxu0 %vm257_vm0, %v245_v58 }
  0xb4   :  { %v179_v4 = vmul.f32 %v451_v37, %v161_v59 }
  0xb5   :  { %271 = vmatpush.msra.mxu0 %v244_v60 }
  0xb6   :  { %v186_v9 = vadd.f32 %v179_v4, %v143_v6 }
  0xb7   :  { %272 = vmatpush.msra.mxu0 %v243_v61  ;;  %v153_v0 = vpop.permute.xlu2 %152 }
  0xb8   :  { %v177_v14 = vmul.f32 %v451_v37, %v153_v0 }
  0xbc   :  { %v69_v62 = vpop.permute.xlu1 %68 }
  0xbd   :  { %v98_v7 = vmul.f32 %v96_v35, %v69_v62 }
  0xbf   :  { %v149_v5 = vpop.permute.xlu2 %148  ;;  %v141_v15 = vadd.f32 %v134_v8, %v98_v7 }
  0xc0   :  { %v176_v30 = vmul.f32 %v451_v37, %v149_v5 }
  0xc1   :  { %v184_v20 = vadd.f32 %v177_v14, %v141_v15 }
  0xc5   :  { %v157_v63 = vpop.permute.xlu1 %156 }
  0xc6   :  { %v178_v16 = vmul.f32 %v451_v37, %v157_v63 }
  0xc8   :  { %v205_v19 = vpop.permute.xlu2 %204  ;;  %v185_v21 = vadd.f32 %v178_v16, %v142_v18 }
  0xc9   :  { %v233_v23 = vadd.f32 %v205_v19, %v184_v20 }
  0xcb   :  { %v240_v29 = vmax.f32 %v233_v23, 0.0 }
  0xce   :  { %v106_v1 = vpop.permute.xlu1 %105 }
  0xcf   :  { %v133_v27 = vmul.f32 %v132_v36, %v106_v1 }
  0xd7   :  { %v215_v10 = vpop.permute.xlu1 %214 }
  0xd8   :  { %v235_v13 = vadd.f32 %v215_v10, %v186_v9 }
  0xda   :  { %v242_v17 = vmax.f32 %v235_v13, 0.0 }
  0xdc   :  { %273 = vmatpush.msra.mxu0 %v242_v17 }
  0xdf   :  { %v210_v22 = vpop.permute.xlu1 %209 }
  0xe0   :  { %v234_v24 = vadd.f32 %v210_v22, %v185_v21 }
  0xe2   :  { %v241_v25 = vmax.f32 %v234_v24, 0.0  ;;  %v64_v26 = vpop.permute.xlu0 %63 }
  0xe3   :  { %v97_v28 = vmul.f32 %v96_v35, %v64_v26  ;;  %v251_v35 = vpop.permute.xlu2 %250 }
  0xe4   :  { %274 = vmatpush.msra.mxu0 %v241_v25 }
  0xe5   :  { %v140_v31 = vadd.f32 %v133_v27, %v97_v28 }
  0xe6   :  { %275 = vmatpush.msra.mxu0 %v240_v29 }
  0xe7   :  { %v200_v32 = vpop.permute.xlu1 %199  ;;  %v183_v33 = vadd.f32 %v176_v30, %v140_v31 }
  0xe9   :  { %v232_v34 = vadd.f32 %v200_v32, %v183_v33 }
  0xeb   :  { %v239_v38 = vmax.f32 %v232_v34, 0.0 }
  0xed   :  { %276 = vmatpush.msra.mxu0 %v239_v38 }
  0xee   :  { %300 = vmatmul.msk.f32.vlgmr.msra.gmra.mxu0 %vm253_vm1, %v246_v39 }
 0x16b   :  { %v278_v36 = vpop.f32.mrf.mxu0 }
 0x16c   :  { %v279_v37 = vadd.f32 %v278_v36, %v251_v35 }
 0x16e   :  { %282 = vst.msk [vmem:[#allocation2] sm:$0xf] %vm281_vm2, %v279_v37 }
 0x16f   :  { %293 = dma.vmem_to_hbm [thread:$0]  %s289_s0, 64, %s291_s26, [#allocation3]  }
 0x170   :  { %355 = dma.done.wait [#allocation3], 64  }
 0x171   :  { %356 = vsyncadd [#allocation3], 4294967232 }
 0x172   :  { %298 = vsyncpa [#allocation3], 1 }

// kernel: tpu_custom_call.1
= control target key start
LH: loop header
LB: loop body
LE: loop exit
PB: predicated region body
PF: predicated region fallthrough
CT: control target
= control target key end

     0   :  { %v318_v2 = vmov 2   ;;  %v319_v3 = vmov 1   ;;  %v320_v4 = vmov 0   ;;  %s406_s0 = inlined_call_operand.vmem [shape: f32[3,8], index: 0, kind: input, shape index: {}]   ;;  %s407_s1 = inlined_call_operand.vmem [shape: f32[50,3], index: 1, kind: input, shape index: {}]   ;;  %s408_s2 = inlined_call_operand.vmem [shape: f32[50,1], index: 2, kind: input, shape index: {}]   ;;  %s409_s3 = inlined_call_operand.vmem [shape: f32[4,50], index: 3, kind: input, shape index: {}]   ;;  %s410_s4 = inlined_call_operand.vmem [shape: f32[4,1], index: 4, kind: input, shape index: {}]   ;;  %s411_s5 = inlined_call_operand.hbm [shape: f32[4,8], index: 5, kind: output, shape index: {}]  }
   0x1   :  { %v28_v0 = vld [vmem:[%s407_s1 + $0x30] sm:$0x3]  ;;  %v27_v1 = vld [vmem:[%s407_s1 + $0x28] sm:$0xff]  ;;  %276 = vset.pattern.permute.xlu2 %v318_v2  ;;  %273 = vset.pattern.permute.xlu0 %v319_v3 }
   0x2   :  { %274 = vset.pattern.permute.xlu1 %v320_v4  ;;  %140 = vperm.xlu2 %276, %v28_v0  }
   0x3   :  { %10 = vsyncpa [#allocation3], 0  ;;  %97 = vperm.xlu0 %273, %v28_v0   ;;  %56 = vperm.xlu1 %274, %v27_v1   ;;  %v24_v5 = vld [vmem:[%s407_s1 + $0x10] sm:$0xff]  ;;  %v26_v6 = vld [vmem:[%s407_s1 + $0x20] sm:$0xff]  ;;  %vm225_vm0 = vcmask 1041408   ;;  %vm221_vm1 = vcmask 408576  }
   0x4   :  { %v25_v7 = vld [vmem:[%s407_s1 + $0x18] sm:$0xff]  ;;  %v164_v8 = vld [vmem:[%s408_s2 + $0x30] sm:$0x3]  ;;  %v163_v9 = vld [vmem:[%s408_s2 + $0x28] sm:$0xff]  ;;  %s321_s23 = smov [#allocation2]   ;;  %s258_s27 = sshll.u32 %s411_s5, 4  ;;  %s259_s27 = int_to_ptr.hbm [resolvable:$true] %s258_s27 }
   0x5   :  { %v161_v10 = vld [vmem:[%s408_s2 + $0x18] sm:$0xff]  ;;  %v23_v11 = vld [vmem:[%s407_s1 + $0x8] sm:$0xff]  ;;  %v215_v12 = vld [vmem:[%s410_s4] sm:$0xf]  ;;  %s256_s24 = sshll.u32 %s321_s23, 4  ;;  %vm249_vm2 = vcmask 60416   ;;  %s257_s24 = int_to_ptr.vmem [resolvable:$true] %s256_s24 }
   0x6   :  { %v162_v13 = vld [vmem:[%s408_s2 + $0x20] sm:$0xff]  ;;  %v160_v15 = vld [vmem:[%s408_s2 + $0x10] sm:$0xff]  ;;  %v159_v16 = vld [vmem:[%s408_s2 + $0x8] sm:$0xff] }
   0x7   :  { %v22_v14 = vld [vmem:[%s407_s1] sm:$0xff] }
   0x8   :  { %v158_v17 = vld [vmem:[%s408_s2] sm:$0xff] }
   0x9   :  { %v21_v29 = vld [vmem:[%s406_s0] sm:$0x7] }
   0xa   :  { %277 = vset.pattern.permute.xlu2 %v320_v4  ;;  %v100_v30 = vperm.slane %v21_v29, 1  ;;  %v64_v32 = vperm.slane %v21_v29, 0  ;;  %v143_v36 = vperm.slane %v21_v29, 2 }
   0xb   :  { %275 = vset.pattern.permute.xlu1 %v319_v3  ;;  %81 = vperm.xlu0 %273, %v24_v5  }
   0xc   :  { %93 = vperm.xlu1 %275, %v27_v1   ;;  %51 = vperm.xlu2 %277, %v26_v6  }
  0x13   :  { %284 = vset.pattern.permute.xlu0 %v318_v2 }
  0x14   :  { %89 = vperm.xlu1 %275, %v26_v6   ;;  %278 = vset.pattern.permute.xlu2 %v318_v2 }
  0x15   :  { %124 = vperm.xlu0 %284, %v24_v5   ;;  %136 = vperm.xlu2 %278, %v27_v1  }
  0x1c   :  { %85 = vperm.xlu1 %275, %v25_v7  }
  0x1d   :  { %285 = vset.pattern.permute.xlu0 %v320_v4  ;;  %132 = vperm.xlu2 %278, %v26_v6  }
  0x1e   :  { %61 = vperm.xlu0 %285, %v28_v0  }
  0x24   :  { %279 = vset.pattern.permute.xlu1 %v320_v4 }
  0x25   :  { %280 = vset.pattern.permute.xlu2 %v320_v4  ;;  %197 = vperm.xlu1 %279, %v164_v8  }
  0x26   :  { %46 = vperm.xlu0 %285, %v25_v7   ;;  %41 = vperm.xlu2 %280, %v24_v5  }
  0x2d   :  { %281 = vset.pattern.permute.xlu1 %v318_v2 }
  0x2e   :  { %128 = vperm.xlu1 %281, %v25_v7   ;;  %192 = vperm.xlu2 %280, %v163_v9  }
  0x2f   :  { %182 = vperm.xlu0 %285, %v161_v10  }
  0x36   :  { %282 = vset.pattern.permute.xlu1 %v320_v4  ;;  %283 = vset.pattern.permute.xlu2 %v319_v3 }
  0x37   :  { %77 = vperm.xlu2 %283, %v23_v11   ;;  %36 = vperm.xlu1 %282, %v23_v11  }
  0x38   :  { %218 = vperm.xlu0 %285, %v215_v12  }
  0x3f   :  { %286 = vset.pattern.permute.xlu2 %v320_v4  ;;  %187 = vperm.xlu1 %282, %v162_v13  }
  0x40   :  { %31 = vperm.xlu2 %286, %v22_v14  }
  0x47   :  { %287 = vset.pattern.permute.xlu1 %v319_v3 }
  0x48   :  { %73 = vperm.xlu1 %287, %v22_v14   ;;  %288 = vset.pattern.permute.xlu2 %v318_v2 }
  0x49   :  { %120 = vperm.xlu2 %288, %v23_v11  }
  0x50   :  { %289 = vset.pattern.permute.xlu1 %v318_v2 }
  0x51   :  { %116 = vperm.xlu1 %289, %v22_v14   ;;  %290 = vset.pattern.permute.xlu2 %v320_v4 }
  0x52   :  { %177 = vperm.xlu2 %290, %v160_v15  }
  0x59   :  { %291 = vset.pattern.permute.xlu1 %v320_v4 }
  0x5a   :  { %172 = vperm.xlu1 %291, %v159_v16   ;;  %167 = vperm.xlu2 %290, %v158_v17  }
  0x5c   :  { %v141_v18 = vpop.permute.xlu2 %140 }
  0x5d   :  { %v150_v44 = vmul.f32 %v143_v36, %v141_v18 }
  0x66   :  { %v52_v19 = vpop.permute.xlu2 %51 }
  0x67   :  { %v69_v58 = vmul.f32 %v64_v32, %v52_v19 }
  0x6f   :  { %v137_v20 = vpop.permute.xlu2 %136 }
  0x70   :  { %v149_v40 = vmul.f32 %v143_v36, %v137_v20 }
  0x75   :  { %v57_v21 = vpop.permute.xlu1 %56  ;;  %v98_v22 = vpop.permute.xlu0 %97 }
  0x76   :  { %v107_v35 = vmul.f32 %v100_v30, %v98_v22  ;;  %v70_v37 = vmul.f32 %v64_v32, %v57_v21 }
  0x77   :  { %v133_v23 = vpop.permute.xlu2 %132 }
  0x78   :  { %v148_v0 = vmul.f32 %v143_v36, %v133_v23 }
  0x7d   :  { %v82_v24 = vpop.permute.xlu0 %81 }
  0x7e   :  { %v94_v25 = vpop.permute.xlu1 %93  ;;  %v103_v60 = vmul.f32 %v100_v30, %v82_v24 }
  0x7f   :  { %v106_v33 = vmul.f32 %v100_v30, %v94_v25 }
  0x80   :  { %v42_v26 = vpop.permute.xlu2 %41 }
  0x81   :  { %v113_v41 = vadd.f32 %v106_v33, %v70_v37  ;;  %v67_v61 = vmul.f32 %v64_v32, %v42_v26 }
  0x83   :  { %v156_v45 = vadd.f32 %v149_v40, %v113_v41  ;;  %v110_v3 = vadd.f32 %v103_v60, %v67_v61 }
  0x86   :  { %v90_v27 = vpop.permute.xlu1 %89 }
  0x87   :  { %v125_v28 = vpop.permute.xlu0 %124  ;;  %v105_v56 = vmul.f32 %v100_v30, %v90_v27 }
  0x88   :  { %v193_v31 = vpop.permute.xlu2 %192  ;;  %v146_v4 = vmul.f32 %v143_v36, %v125_v28 }
  0x89   :  { %v205_v48 = vadd.f32 %v193_v31, %v156_v45  ;;  %v112_v1 = vadd.f32 %v105_v56, %v69_v58 }
  0x8a   :  { %v153_v11 = vadd.f32 %v146_v4, %v110_v3 }
  0x8b   :  { %v212_v51 = vmax.f32 %v205_v48, 0.0  ;;  %v155_v7 = vadd.f32 %v148_v0, %v112_v1 }
  0x8e   :  { %v86_v34 = vpop.permute.xlu1 %85 }
  0x8f   :  { %v104_v62 = vmul.f32 %v100_v30, %v86_v34 }
  0x90   :  { %v62_v38 = vpop.permute.xlu0 %61 }
  0x91   :  { %v71_v39 = vmul.f32 %v64_v32, %v62_v38  ;;  %v78_v43 = vpop.permute.xlu2 %77  ;;  %v214_v38 = vld [vmem:[%s409_s3] sm:$0xf] }
  0x92   :  { %v102_v18 = vmul.f32 %v100_v30, %v78_v43 }
  0x93   :  { %v114_v42 = vadd.f32 %v107_v35, %v71_v39 }
  0x95   :  { %v157_v46 = vadd.f32 %v150_v44, %v114_v42 }
  0x97   :  { %v198_v47 = vpop.permute.xlu1 %197 }
  0x98   :  { %v206_v49 = vadd.f32 %v198_v47, %v157_v46  ;;  %v47_v54 = vpop.permute.xlu0 %46 }
  0x99   :  { %v68_v57 = vmul.f32 %v64_v32, %v47_v54 }
  0x9a   :  { %v213_v50 = vmax.f32 %v206_v49, 0.0  ;;  %v32_v52 = vpop.permute.xlu2 %31 }
  0x9b   :  { %v111_v2 = vadd.f32 %v104_v62, %v68_v57  ;;  %v65_v22 = vmul.f32 %v64_v32, %v32_v52 }
  0x9c   :  { %267 = vmatpush.msk.msra.mxu0 %vm225_vm0, %v213_v50 }
  0x9e   :  { %239 = vmatpush.msra.mxu0 %v212_v51 }
  0xa0   :  { %v129_v53 = vpop.permute.xlu1 %128 }
  0xa1   :  { %v147_v63 = vmul.f32 %v143_v36, %v129_v53  ;;  %v183_v6 = vpop.permute.xlu0 %182 }
  0xa3   :  { %v121_v55 = vpop.permute.xlu2 %120  ;;  %v154_v5 = vadd.f32 %v147_v63, %v111_v2 }
  0xa4   :  { %v145_v24 = vmul.f32 %v143_v36, %v121_v55 }
  0xa5   :  { %v203_v10 = vadd.f32 %v183_v6, %v154_v5 }
  0xa7   :  { %v210_v15 = vmax.f32 %v203_v10, 0.0 }
  0xa9   :  { %v37_v59 = vpop.permute.xlu1 %36 }
  0xaa   :  { %v66_v19 = vmul.f32 %v64_v32, %v37_v59 }
  0xac   :  { %v178_v8 = vpop.permute.xlu2 %177  ;;  %v109_v25 = vadd.f32 %v102_v18, %v66_v19 }
  0xad   :  { %v202_v13 = vadd.f32 %v178_v8, %v153_v11 }
  0xae   :  { %v152_v29 = vadd.f32 %v145_v24, %v109_v25 }
  0xaf   :  { %v209_v16 = vmax.f32 %v202_v13, 0.0 }
  0xb1   :  { %v188_v9 = vpop.permute.xlu1 %187 }
  0xb2   :  { %v204_v12 = vadd.f32 %v188_v9, %v155_v7 }
  0xb4   :  { %v211_v14 = vmax.f32 %v204_v12, 0.0  ;;  %v168_v28 = vpop.permute.xlu2 %167 }
  0xb6   :  { %240 = vmatpush.msra.mxu0 %v211_v14 }
  0xb8   :  { %241 = vmatpush.msra.mxu0 %v210_v15 }
  0xba   :  { %v74_v17 = vpop.permute.xlu1 %73  ;;  %242 = vmatpush.msra.mxu0 %v209_v16 }
  0xbb   :  { %v101_v20 = vmul.f32 %v100_v30, %v74_v17  ;;  %v219_v30 = vpop.permute.xlu0 %218 }
  0xbd   :  { %v108_v26 = vadd.f32 %v101_v20, %v65_v22 }
  0xc3   :  { %v117_v21 = vpop.permute.xlu1 %116 }
  0xc4   :  { %v144_v23 = vmul.f32 %v143_v36, %v117_v21 }
  0xc6   :  { %v151_v27 = vadd.f32 %v144_v23, %v108_v26 }
  0xc8   :  { %v200_v33 = vadd.f32 %v168_v28, %v151_v27 }
  0xca   :  { %v207_v37 = vmax.f32 %v200_v33, 0.0 }
  0xcc   :  { %v173_v31 = vpop.permute.xlu1 %172 }
  0xcd   :  { %v201_v34 = vadd.f32 %v173_v31, %v152_v29 }
  0xcf   :  { %v208_v35 = vmax.f32 %v201_v34, 0.0 }
  0xd1   :  { %243 = vmatpush.msra.mxu0 %v208_v35 }
  0xd3   :  { %244 = vmatpush.msra.mxu0 %v207_v37 }
  0xd4   :  { %268 = vmatmul.msk.f32.vlgmr.msra.gmra.mxu0 %vm221_vm1, %v214_v38 }
 0x151   :  { %v246_v32 = vpop.f32.mrf.mxu0 }
 0x152   :  { %v247_v36 = vadd.f32 %v246_v32, %v219_v30 }
 0x154   :  { %250 = vst.msk [vmem:[#allocation2] sm:$0xf] %vm249_vm2, %v247_v36 }
 0x155   :  { %261 = dma.vmem_to_hbm [thread:$0]  %s257_s24, 64, %s259_s27, [#allocation3]  }
 0x156   :  { %316 = dma.done.wait [#allocation3], 64  }
 0x157   :  { %317 = vsyncadd [#allocation3], 4294967232 }
 0x158   :  { %266 = vsyncpa [#allocation3], 1 }

</bundles_post_ra>
